<compile_context>
chip_gen: v5e
topology: v5e:2x2
jax: 0.10.0
libtpu: 0.0.40
codegen_flags: <defaults>
</compile_context>

<pallas_src>
import functools

import jax
import jax.numpy as jnp
from jax.experimental import pallas as pl
from jax.experimental.pallas import tpu as pltpu

_LANE = 128
_SUBLANE = 8
_MAX_BATCH_TILE = 512  # x tile is only tb*in_f*4 bytes, so 512 rows is cheap.


def _round_up(x, m):
    return ((x + m - 1) // m) * m


def _cdiv(a, b):
    return -(-a // b)


def _feature_align():
    """v6e/v7x MXUs are 2x256x256 -> align >128 widths to 256; 128 elsewhere."""
    try:
        kind = jax.devices()[0].device_kind.lower()
    except Exception:
        return _LANE
    if any(tag in kind for tag in ("v6", "v7", "tpu7", "7x")):
        return 256
    return _LANE


def _pad_dim(d, align):
    if d <= _LANE:
        return _LANE
    return _round_up(d, align)


def _mlp_kernel(x_ref, *refs, neg_slope, n_layers):
    """Fused forward of the whole MLP on one batch tile.

    refs = (w0, b0, w1, b1, ..., w_{L-1}, b_{L-1}, o_ref).
    Weights are bf16 (MXU-native); biases / activations are f32.  All output
    feature dims are padded to lane multiples with zero weight columns + zero
    bias, so padded lanes stay exactly zero through every layer
    (LeakyReLU(0) == 0); the wrapper slices the real class columns back out.
    """
    o_ref = refs[-1]
    h = x_ref[...]  # f32 (tb, in_features)
    for i in range(n_layers):
        w = refs[2 * i][...]      # bf16 (k, n)
        b = refs[2 * i + 1][...]  # f32  (1, n)
        # bf16 inputs, f32 accumulate: native MXU rate on v5e/v6e/v7x.
        h = jnp.dot(h.astype(jnp.bfloat16), w,
                    preferred_element_type=jnp.float32) + b
        if i < n_layers - 1:      # LeakyReLU on hidden layers only
            h = jnp.maximum(h, jnp.float32(neg_slope) * h)
    o_ref[...] = h.astype(o_ref.dtype)


def _resident_spec(shape, single_buffer):
    # Constant block index -> the tile stays VMEM-resident across batch steps.
    if single_buffer:
        # Buffered(1): don't waste a second pipeline buffer on a never-changing
        # block (halves weight VMEM footprint; matters for v7x's 64 MiB VMEM).
        return pl.BlockSpec(shape, lambda i: (0, 0), pipeline_mode=pl.Buffered(1))
    return pl.BlockSpec(shape, lambda i: (0, 0))


@functools.partial(
    jax.jit,
    static_argnames=("neg_slope", "n_layers", "tb", "single_buffer_weights"),
)
def _fused_mlp(x, params, *, neg_slope, n_layers, tb, single_buffer_weights):
    """Whole MLP as ONE pallas_call; grid over the batch axis only."""
    B, in_f = x.shape
    out_p = params[-2].shape[1]

    kernel = functools.partial(_mlp_kernel, neg_slope=neg_slope, n_layers=n_layers)

    in_specs = [pl.BlockSpec((tb, in_f), lambda i: (i, 0))]
    for p in params:
        in_specs.append(_resident_spec(p.shape, single_buffer_weights))

    # Explicit VMEM budget: resident params (x2 safety) + double-buffered
    # x/out tiles + f32 intermediate activations + slack, clamped to a range
    # that is legal on every generation (v5e scoped default 16 MiB, v7x
    # physical 64 MiB).
    param_bytes = sum(int(p.size) * p.dtype.itemsize for p in params)
    widest = max(int(p.shape[1]) for p in params[0::2])
    io_tile_bytes = 4 * tb * (in_f + out_p)
    act_bytes = 4 * tb * widest
    needed = 2 * param_bytes + 2 * io_tile_bytes + 2 * act_bytes + (4 << 20)
    vmem_limit = int(max(32 << 20, min(needed, 48 << 20)))
    # TODO(synk): add a K-tiled / emit_pipeline fallback that streams weight
    # tiles from HBM (memory_space=pl.ANY) once resident weights exceed the
    # v7x VMEM budget; not needed at these hidden widths.

    return pl.pallas_call(
        kernel,
        out_shape=jax.ShapeDtypeStruct((B, out_p), jnp.float32),
        grid=(_cdiv(B, tb),),
        in_specs=in_specs,
        out_specs=pl.BlockSpec((tb, out_p), lambda i: (i, 0)),
        compiler_params=pltpu.CompilerParams(
            dimension_semantics=("parallel",),
            vmem_limit_bytes=vmem_limit,
        ),
    )(x, *params)


class MLPPallas:
    """JAX/Pallas port of the PyTorch MLP module (single fused kernel)."""

    def __init__(self, n_inputs, n_hidden, n_classes, neg_slope, key):
        self.n_inputs = int(n_inputs)
        self.n_hidden = list(n_hidden)
        self.n_classes = int(n_classes)
        self.neg_slope = float(neg_slope)

        align = _feature_align()
        dims = [self.n_inputs] + self.n_hidden + [self.n_classes]
        # Only OUTPUT feature dims get padded (lane-dense matmuls / stores);
        # the input feature dim stays at its true width so x never needs a
        # padded copy in the wrapper.
        out_pads = [_pad_dim(d, align) for d in dims[1:]]

        flat = []
        for li, (in_f, out_f) in enumerate(zip(dims[:-1], dims[1:])):
            key, wkey = jax.random.split(key)
            in_p = dims[0] if li == 0 else out_pads[li - 1]
            out_p = out_pads[li]
            # PyTorch init: weight ~ N(0, 0.0001), bias = 0.  Stored
            # transposed as (in, out); padded rows/cols are zero.  Weights in
            # bf16 (MXU-native), biases in f32.
            w_real = 0.0001 * jax.random.normal(wkey, (in_f, out_f), jnp.float32)
            w = jnp.zeros((in_p, out_p), jnp.float32).at[:in_f, :out_f].set(w_real)
            flat += [w.astype(jnp.bfloat16), jnp.zeros((1, out_p), jnp.float32)]
        self.params = tuple(flat)
        self.n_layers = len(dims) - 1
        # Prefer single-buffered resident weights; auto-fallback to default
        # double-buffering if this JAX build rejects pipeline_mode/Buffered(1).
        self._single_buffer_weights = True

    def _pick_batch_tile(self, B):
        if B <= _SUBLANE:
            return B  # one full-extent block (allowed even when < 8 rows)
        tb = min(_MAX_BATCH_TILE, (B // _SUBLANE) * _SUBLANE)  # multiple of 8, <= B
        # v7x has 2 TensorCores: when there is enough work, make sure the
        # "parallel" batch grid has at least 2 balanced tiles.
        if _cdiv(B, tb) < 2:
            tb = max(_SUBLANE, _round_up(_cdiv(B, 2), _SUBLANE))
        return tb

    def forward(self, x):
        B, in_f = x.shape
        assert in_f == self.n_inputs, (in_f, self.n_inputs)
        x = x.astype(jnp.float32)
        tb = self._pick_batch_tile(B)

        kwargs = dict(neg_slope=self.neg_slope, n_layers=self.n_layers, tb=tb)
        try:
            out_p = _fused_mlp(
                x, self.params,
                single_buffer_weights=self._single_buffer_weights, **kwargs)
        except Exception:
            if not self._single_buffer_weights:
                raise
            self._single_buffer_weights = False
            out_p = _fused_mlp(x, self.params,
                               single_buffer_weights=False, **kwargs)
        return out_p[:, : self.n_classes]

    __call__ = forward


if __name__ == "__main__":
    key = jax.random.PRNGKey(0)
    key, xkey, mkey = jax.random.split(key, 3)

    batch = 8
    n_inputs = 32
    n_hidden = [64, 32]
    n_classes = 10
    neg_slope = 0.02

    mlp = MLPPallas(n_inputs, n_hidden, n_classes, neg_slope, mkey)
    x = jax.random.normal(xkey, (batch, n_inputs), dtype=jnp.float32)

    out = jax.block_until_ready(mlp(x))
    assert out.shape == (batch, n_classes), out.shape
    assert out.dtype == jnp.float32, out.dtype

    # Pure-JAX reference with identical math (bf16 weights/activations into
    # the dot, f32 accumulate) to validate the fused kernel end to end.
    def ref_forward(xx):
        h = xx.astype(jnp.float32)
        for i in range(mlp.n_layers):
            w, b = mlp.params[2 * i], mlp.params[2 * i + 1]
            h = jnp.dot(h.astype(jnp.bfloat16), w,
                        preferred_element_type=jnp.float32) + b
            if i < mlp.n_layers - 1:
                h = jnp.maximum(h, neg_slope * h)
        return h[:, :n_classes]

    ref = ref_forward(x)
    assert jnp.allclose(out, ref, atol=1e-8, rtol=1e-2), float(
        jnp.max(jnp.abs(out - ref)))
    print("KERNEL_OK")
</pallas_src>

<mosaic_0001>
module attributes {stable_mosaic.version = 11 : i64} {
  func.func @_mlp_kernel(%arg0: i32, %arg1: memref<8x32xf32, #tpu.memory_space<vmem>>, %arg2: memref<32x128xbf16, #tpu.memory_space<vmem>>, %arg3: memref<1x128xf32, #tpu.memory_space<vmem>>, %arg4: memref<128x128xbf16, #tpu.memory_space<vmem>>, %arg5: memref<1x128xf32, #tpu.memory_space<vmem>>, %arg6: memref<128x128xbf16, #tpu.memory_space<vmem>>, %arg7: memref<1x128xf32, #tpu.memory_space<vmem>>, %arg8: memref<8x128xf32, #tpu.memory_space<vmem>>) attributes {dimension_semantics = [#tpu.dimension_semantics<parallel>], iteration_bounds = array<i64: 1>, scalar_prefetch = 0 : i64, scratch_operands = 0 : i64, tpu.core_type = #tpu.core_type<tc>, window_params = [{transform_indices = @transform_0, window_bounds = array<i64: 8, 32>}, {pipeline_mode = #tpu.pipeline_mode<synchronous>, transform_indices = @transform_1, window_bounds = array<i64: 32, 128>}, {pipeline_mode = #tpu.pipeline_mode<synchronous>, transform_indices = @transform_2, window_bounds = array<i64: 1, 128>}, {pipeline_mode = #tpu.pipeline_mode<synchronous>, transform_indices = @transform_3, window_bounds = array<i64: 128, 128>}, {pipeline_mode = #tpu.pipeline_mode<synchronous>, transform_indices = @transform_4, window_bounds = array<i64: 1, 128>}, {pipeline_mode = #tpu.pipeline_mode<synchronous>, transform_indices = @transform_5, window_bounds = array<i64: 128, 128>}, {pipeline_mode = #tpu.pipeline_mode<synchronous>, transform_indices = @transform_6, window_bounds = array<i64: 1, 128>}, {transform_indices = @transform_7, window_bounds = array<i64: 8, 128>}]} {
    %c0 = arith.constant 0 : index
    %c0_0 = arith.constant 0 : index
    %0 = vector.load %arg1[%c0, %c0_0] : memref<8x32xf32, #tpu.memory_space<vmem>>, vector<8x32xf32>
    %c0_1 = arith.constant 0 : index
    %c0_2 = arith.constant 0 : index
    %1 = vector.load %arg2[%c0_1, %c0_2] : memref<32x128xbf16, #tpu.memory_space<vmem>>, vector<32x128xbf16>
    %c0_3 = arith.constant 0 : index
    %c0_4 = arith.constant 0 : index
    %2 = vector.load %arg3[%c0_3, %c0_4] : memref<1x128xf32, #tpu.memory_space<vmem>>, vector<1x128xf32>
    %3 = arith.truncf %0 : vector<8x32xf32> to vector<8x32xbf16>
    %cst = arith.constant dense<0.000000e+00> : vector<8x128xf32>
    %4 = tpu.matmul %3, %1, %cst {dimension_numbers = #tpu.dot_dimension_numbers<[1], [0], [0], [1], [0, 0, 1, 1], [], []>} : vector<8x32xbf16>, vector<32x128xbf16>, vector<8x128xf32> -> vector<8x128xf32>
    %5 = vector.broadcast %2 : vector<1x128xf32> to vector<8x128xf32>
    %6 = arith.addf %4, %5 : vector<8x128xf32>
    %cst_5 = arith.constant 2.000000e-02 : f32
    %7 = vector.broadcast %cst_5 : f32 to vector<8x128xf32>
    %8 = arith.mulf %7, %6 : vector<8x128xf32>
    %9 = arith.maximumf %6, %8 : vector<8x128xf32>
    %c0_6 = arith.constant 0 : index
    %c0_7 = arith.constant 0 : index
    %10 = vector.load %arg4[%c0_6, %c0_7] : memref<128x128xbf16, #tpu.memory_space<vmem>>, vector<128x128xbf16>
    %c0_8 = arith.constant 0 : index
    %c0_9 = arith.constant 0 : index
    %11 = vector.load %arg5[%c0_8, %c0_9] : memref<1x128xf32, #tpu.memory_space<vmem>>, vector<1x128xf32>
    %12 = arith.truncf %9 : vector<8x128xf32> to vector<8x128xbf16>
    %cst_10 = arith.constant dense<0.000000e+00> : vector<8x128xf32>
    %13 = tpu.matmul %12, %10, %cst_10 {dimension_numbers = #tpu.dot_dimension_numbers<[1], [0], [0], [1], [0, 0, 1, 1], [], []>} : vector<8x128xbf16>, vector<128x128xbf16>, vector<8x128xf32> -> vector<8x128xf32>
    %14 = vector.broadcast %11 : vector<1x128xf32> to vector<8x128xf32>
    %15 = arith.addf %13, %14 : vector<8x128xf32>
    %cst_11 = arith.constant 2.000000e-02 : f32
    %16 = vector.broadcast %cst_11 : f32 to vector<8x128xf32>
    %17 = arith.mulf %16, %15 : vector<8x128xf32>
    %18 = arith.maximumf %15, %17 : vector<8x128xf32>
    %c0_12 = arith.constant 0 : index
    %c0_13 = arith.constant 0 : index
    %19 = vector.load %arg6[%c0_12, %c0_13] : memref<128x128xbf16, #tpu.memory_space<vmem>>, vector<128x128xbf16>
    %c0_14 = arith.constant 0 : index
    %c0_15 = arith.constant 0 : index
    %20 = vector.load %arg7[%c0_14, %c0_15] : memref<1x128xf32, #tpu.memory_space<vmem>>, vector<1x128xf32>
    %21 = arith.truncf %18 : vector<8x128xf32> to vector<8x128xbf16>
    %cst_16 = arith.constant dense<0.000000e+00> : vector<8x128xf32>
    %22 = tpu.matmul %21, %19, %cst_16 {dimension_numbers = #tpu.dot_dimension_numbers<[1], [0], [0], [1], [0, 0, 1, 1], [], []>} : vector<8x128xbf16>, vector<128x128xbf16>, vector<8x128xf32> -> vector<8x128xf32>
    %23 = vector.broadcast %20 : vector<1x128xf32> to vector<8x128xf32>
    %24 = arith.addf %22, %23 : vector<8x128xf32>
    %c0_17 = arith.constant 0 : index
    %c0_18 = arith.constant 0 : index
    %25 = vector.load %arg8[%c0_17, %c0_18] : memref<8x128xf32, #tpu.memory_space<vmem>>, vector<8x128xf32>
    tpu.vector_store %arg8[%c0_17, %c0_18], %24 {strides = array<i32>} : memref<8x128xf32, #tpu.memory_space<vmem>>, vector<8x128xf32>,
    return
  }
  func.func @transform_0(%arg0: i32) -> (i32, i32) {
    %c0_i32 = arith.constant 0 : i32
    %c0_i32_0 = arith.constant 0 : i32
    return %arg0, %c0_i32 : i32, i32
  }
  func.func @transform_1(%arg0: i32) -> (i32, i32) {
    %c0_i32 = arith.constant 0 : i32
    %c0_i32_0 = arith.constant 0 : i32
    %c0_i32_1 = arith.constant 0 : i32
    return %c0_i32, %c0_i32_0 : i32, i32
  }
  func.func @transform_2(%arg0: i32) -> (i32, i32) {
    %c0_i32 = arith.constant 0 : i32
    %c0_i32_0 = arith.constant 0 : i32
    %c0_i32_1 = arith.constant 0 : i32
    return %c0_i32, %c0_i32_0 : i32, i32
  }
  func.func @transform_3(%arg0: i32) -> (i32, i32) {
    %c0_i32 = arith.constant 0 : i32
    %c0_i32_0 = arith.constant 0 : i32
    %c0_i32_1 = arith.constant 0 : i32
    return %c0_i32, %c0_i32_0 : i32, i32
  }
  func.func @transform_4(%arg0: i32) -> (i32, i32) {
    %c0_i32 = arith.constant 0 : i32
    %c0_i32_0 = arith.constant 0 : i32
    %c0_i32_1 = arith.constant 0 : i32
    return %c0_i32, %c0_i32_0 : i32, i32
  }
  func.func @transform_5(%arg0: i32) -> (i32, i32) {
    %c0_i32 = arith.constant 0 : i32
    %c0_i32_0 = arith.constant 0 : i32
    %c0_i32_1 = arith.constant 0 : i32
    return %c0_i32, %c0_i32_0 : i32, i32
  }
  func.func @transform_6(%arg0: i32) -> (i32, i32) {
    %c0_i32 = arith.constant 0 : i32
    %c0_i32_0 = arith.constant 0 : i32
    %c0_i32_1 = arith.constant 0 : i32
    return %c0_i32, %c0_i32_0 : i32, i32
  }
  func.func @transform_7(%arg0: i32) -> (i32, i32) {
    %c0_i32 = arith.constant 0 : i32
    %c0_i32_0 = arith.constant 0 : i32
    return %arg0, %c0_i32 : i32, i32
  }
}

module attributes {stable_mosaic.version = 11 : i64} {
  func.func @_mlp_kernel(%arg0: i32, %arg1: memref<8x32xf32, #tpu.memory_space<vmem>>, %arg2: memref<32x128xbf16, #tpu.memory_space<vmem>>, %arg3: memref<1x128xf32, #tpu.memory_space<vmem>>, %arg4: memref<128x128xbf16, #tpu.memory_space<vmem>>, %arg5: memref<1x128xf32, #tpu.memory_space<vmem>>, %arg6: memref<128x128xbf16, #tpu.memory_space<vmem>>, %arg7: memref<1x128xf32, #tpu.memory_space<vmem>>, %arg8: memref<8x128xf32, #tpu.memory_space<vmem>>) attributes {dimension_semantics = [#tpu.dimension_semantics<parallel>], iteration_bounds = array<i64: 1>, scalar_prefetch = 0 : i64, scratch_operands = 0 : i64, tpu.core_type = #tpu.core_type<tc>, window_params = [{transform_indices = @transform_0, window_bounds = array<i64: 8, 32>}, {pipeline_mode = #tpu.pipeline_mode<synchronous>, transform_indices = @transform_1, window_bounds = array<i64: 32, 128>}, {pipeline_mode = #tpu.pipeline_mode<synchronous>, transform_indices = @transform_2, window_bounds = array<i64: 1, 128>}, {pipeline_mode = #tpu.pipeline_mode<synchronous>, transform_indices = @transform_3, window_bounds = array<i64: 128, 128>}, {pipeline_mode = #tpu.pipeline_mode<synchronous>, transform_indices = @transform_4, window_bounds = array<i64: 1, 128>}, {pipeline_mode = #tpu.pipeline_mode<synchronous>, transform_indices = @transform_5, window_bounds = array<i64: 128, 128>}, {pipeline_mode = #tpu.pipeline_mode<synchronous>, transform_indices = @transform_6, window_bounds = array<i64: 1, 128>}, {transform_indices = @transform_7, window_bounds = array<i64: 8, 128>}]} {
    %c0 = arith.constant 0 : index
    %c0_0 = arith.constant 0 : index
    %0 = vector.load %arg1[%c0, %c0_0] : memref<8x32xf32, #tpu.memory_space<vmem>>, vector<8x32xf32>
    %c0_1 = arith.constant 0 : index
    %c0_2 = arith.constant 0 : index
    %1 = vector.load %arg2[%c0_1, %c0_2] : memref<32x128xbf16, #tpu.memory_space<vmem>>, vector<32x128xbf16>
    %c0_3 = arith.constant 0 : index
    %c0_4 = arith.constant 0 : index
    %2 = vector.load %arg3[%c0_3, %c0_4] : memref<1x128xf32, #tpu.memory_space<vmem>>, vector<1x128xf32>
    %3 = arith.truncf %0 : vector<8x32xf32> to vector<8x32xbf16>
    %cst = arith.constant dense<0.000000e+00> : vector<8x128xf32>
    %4 = tpu.matmul %3, %1, %cst {dimension_numbers = #tpu.dot_dimension_numbers<[1], [0], [0], [1], [0, 0, 1, 1], [], []>} : vector<8x32xbf16>, vector<32x128xbf16>, vector<8x128xf32> -> vector<8x128xf32>
    %5 = vector.broadcast %2 : vector<1x128xf32> to vector<8x128xf32>
    %6 = arith.addf %4, %5 : vector<8x128xf32>
    %cst_5 = arith.constant 2.000000e-02 : f32
    %7 = vector.broadcast %cst_5 : f32 to vector<8x128xf32>
    %8 = arith.mulf %7, %6 : vector<8x128xf32>
    %9 = arith.maximumf %6, %8 : vector<8x128xf32>
    %c0_6 = arith.constant 0 : index
    %c0_7 = arith.constant 0 : index
    %10 = vector.load %arg4[%c0_6, %c0_7] : memref<128x128xbf16, #tpu.memory_space<vmem>>, vector<128x128xbf16>
    %c0_8 = arith.constant 0 : index
    %c0_9 = arith.constant 0 : index
    %11 = vector.load %arg5[%c0_8, %c0_9] : memref<1x128xf32, #tpu.memory_space<vmem>>, vector<1x128xf32>
    %12 = arith.truncf %9 : vector<8x128xf32> to vector<8x128xbf16>
    %cst_10 = arith.constant dense<0.000000e+00> : vector<8x128xf32>
    %13 = tpu.matmul %12, %10, %cst_10 {dimension_numbers = #tpu.dot_dimension_numbers<[1], [0], [0], [1], [0, 0, 1, 1], [], []>} : vector<8x128xbf16>, vector<128x128xbf16>, vector<8x128xf32> -> vector<8x128xf32>
    %14 = vector.broadcast %11 : vector<1x128xf32> to vector<8x128xf32>
    %15 = arith.addf %13, %14 : vector<8x128xf32>
    %cst_11 = arith.constant 2.000000e-02 : f32
    %16 = vector.broadcast %cst_11 : f32 to vector<8x128xf32>
    %17 = arith.mulf %16, %15 : vector<8x128xf32>
    %18 = arith.maximumf %15, %17 : vector<8x128xf32>
    %c0_12 = arith.constant 0 : index
    %c0_13 = arith.constant 0 : index
    %19 = vector.load %arg6[%c0_12, %c0_13] : memref<128x128xbf16, #tpu.memory_space<vmem>>, vector<128x128xbf16>
    %c0_14 = arith.constant 0 : index
    %c0_15 = arith.constant 0 : index
    %20 = vector.load %arg7[%c0_14, %c0_15] : memref<1x128xf32, #tpu.memory_space<vmem>>, vector<1x128xf32>
    %21 = arith.truncf %18 : vector<8x128xf32> to vector<8x128xbf16>
    %cst_16 = arith.constant dense<0.000000e+00> : vector<8x128xf32>
    %22 = tpu.matmul %21, %19, %cst_16 {dimension_numbers = #tpu.dot_dimension_numbers<[1], [0], [0], [1], [0, 0, 1, 1], [], []>} : vector<8x128xbf16>, vector<128x128xbf16>, vector<8x128xf32> -> vector<8x128xf32>
    %23 = vector.broadcast %20 : vector<1x128xf32> to vector<8x128xf32>
    %24 = arith.addf %22, %23 : vector<8x128xf32>
    %c0_17 = arith.constant 0 : index
    %c0_18 = arith.constant 0 : index
    %25 = vector.load %arg8[%c0_17, %c0_18] : memref<8x128xf32, #tpu.memory_space<vmem>>, vector<8x128xf32>
    tpu.vector_store %arg8[%c0_17, %c0_18], %24 {strides = array<i32>} : memref<8x128xf32, #tpu.memory_space<vmem>>, vector<8x128xf32>,
    return
  }
  func.func @transform_0(%arg0: i32) -> (i32, i32) {
    %c0_i32 = arith.constant 0 : i32
    %c0_i32_0 = arith.constant 0 : i32
    return %arg0, %c0_i32 : i32, i32
  }
  func.func @transform_1(%arg0: i32) -> (i32, i32) {
    %c0_i32 = arith.constant 0 : i32
    %c0_i32_0 = arith.constant 0 : i32
    %c0_i32_1 = arith.constant 0 : i32
    return %c0_i32, %c0_i32_0 : i32, i32
  }
  func.func @transform_2(%arg0: i32) -> (i32, i32) {
    %c0_i32 = arith.constant 0 : i32
    %c0_i32_0 = arith.constant 0 : i32
    %c0_i32_1 = arith.constant 0 : i32
    return %c0_i32, %c0_i32_0 : i32, i32
  }
  func.func @transform_3(%arg0: i32) -> (i32, i32) {
    %c0_i32 = arith.constant 0 : i32
    %c0_i32_0 = arith.constant 0 : i32
    %c0_i32_1 = arith.constant 0 : i32
    return %c0_i32, %c0_i32_0 : i32, i32
  }
  func.func @transform_4(%arg0: i32) -> (i32, i32) {
    %c0_i32 = arith.constant 0 : i32
    %c0_i32_0 = arith.constant 0 : i32
    %c0_i32_1 = arith.constant 0 : i32
    return %c0_i32, %c0_i32_0 : i32, i32
  }
  func.func @transform_5(%arg0: i32) -> (i32, i32) {
    %c0_i32 = arith.constant 0 : i32
    %c0_i32_0 = arith.constant 0 : i32
    %c0_i32_1 = arith.constant 0 : i32
    return %c0_i32, %c0_i32_0 : i32, i32
  }
  func.func @transform_6(%arg0: i32) -> (i32, i32) {
    %c0_i32 = arith.constant 0 : i32
    %c0_i32_0 = arith.constant 0 : i32
    %c0_i32_1 = arith.constant 0 : i32
    return %c0_i32, %c0_i32_0 : i32, i32
  }
  func.func @transform_7(%arg0: i32) -> (i32, i32) {
    %c0_i32 = arith.constant 0 : i32
    %c0_i32_0 = arith.constant 0 : i32
    return %arg0, %c0_i32 : i32, i32
  }
}

</mosaic_0001>

<bundles_post_ra>
// kernel: _fused_mlp.1
= control target key start
LH: loop header
LB: loop body
LE: loop exit
PB: predicated region body
PF: predicated region fallthrough
CT: control target
= control target key end

     0   :  { %12 = vsyncpa [#allocation3], 0  ;;  %s616_s0 = inlined_call_operand.hbm [shape: f32[8,32], index: 0, kind: input, shape index: {}]   ;;  %s617_s1 = inlined_call_operand.hbm [shape: bf16[32,128], index: 1, kind: input, shape index: {}]   ;;  %s618_s2 = inlined_call_operand.vmem [shape: f32[1,128], index: 2, kind: input, shape index: {}]   ;;  %s619_s3 = inlined_call_operand.hbm [shape: bf16[128,128], index: 3, kind: input, shape index: {}]   ;;  %s620_s4 = inlined_call_operand.vmem [shape: f32[1,128], index: 4, kind: input, shape index: {}]   ;;  %s621_s5 = inlined_call_operand.hbm [shape: bf16[128,128], index: 5, kind: input, shape index: {}]   ;;  %s622_s6 = inlined_call_operand.vmem [shape: f32[1,128], index: 6, kind: input, shape index: {}]   ;;  %s623_s7 = inlined_call_operand.hbm [shape: f32[8,128], index: 7, kind: output, shape index: {}]  }
   0x1   :  { %13 = vsyncpa [#allocation6], 0 }
   0x2   :  { %14 = vsyncpa [#allocation9], 0  ;;  %s31_s26 = sshll.u32 %s617_s1, 4  ;;  %s32_s26 = int_to_ptr.hbm [resolvable:$true] %s31_s26 }
   0x3   :  { %15 = vsyncpa [#allocation4], 0  ;;  %s545_s27 = smov [#allocation5]   ;;  %s21_s8 = sshll.u32 %s616_s0, 4  ;;  %s22_s8 = int_to_ptr.hbm [resolvable:$true] %s21_s8 }
   0x4   :  { %s33_s28 = sshll.u32 %s545_s27, 4  ;;  %s546_s9 = smov 64   ;;  %s34_s28 = int_to_ptr.vmem [resolvable:$true] %s33_s28 }
   0x5   :  { %s547_s10 = smov 4   ;;  %s548_s11 = smov [#allocation2]  }
   0x6   :  { %39 = dma.hbm_to_vmem [thread:$0]  %s32_s26, 256, %s34_s28, [#allocation6], %s546_s9, %s546_s9, %s547_s10  }
   0x7   :  { %s23_s12 = sshll.u32 %s548_s11, 4  ;;  %s46_s15 = sshll.u32 %s619_s3, 4  ;;  %s24_s12 = int_to_ptr.vmem [resolvable:$true] %s23_s12  ;;  %s47_s15 = int_to_ptr.hbm [resolvable:$true] %s46_s15 }
   0x8   :  { %26 = dma.hbm_to_vmem [thread:$0]  %s22_s8, 128, %s24_s12, [#allocation3]  }
   0x9   :  { %s61_s17 = sshll.u32 %s621_s5, 4  ;;  %s549_s18 = smov [#allocation7]   ;;  %s62_s17 = int_to_ptr.hbm [resolvable:$true] %s61_s17 }
   0xa   :  { %s48_s19 = sshll.u32 %s549_s18, 4  ;;  %s550_s0 = smov [#allocation8]   ;;  %s49_s19 = int_to_ptr.vmem [resolvable:$true] %s48_s19 }
   0xb   :  { %54 = dma.hbm_to_vmem [thread:$0]  %s47_s15, 1024, %s49_s19, [#allocation6], %s546_s9, %s546_s9, %s547_s10  }
   0xc   :  { %s63_s20 = sshll.u32 %s550_s0, 4  ;;  %s64_s20 = int_to_ptr.vmem [resolvable:$true] %s63_s20 }
   0xd   :  { %69 = dma.hbm_to_vmem [thread:$0]  %s62_s17, 1024, %s64_s20, [#allocation9], %s546_s9, %s546_s9, %s547_s10  }
   0xe   :  { %537 = dma.done.wait [#allocation3], 128  }
   0xf   :  { %538 = vsyncadd [#allocation3], 4294967168 }
  0x10   :  { %539 = dma.done.wait [#allocation6], 1280  }
  0x11   :  { %540 = vsyncadd [#allocation6], 4294966016 }
  0x12   :  { %541 = dma.done.wait [#allocation9], 1024  }
  0x13   :  { %542 = vsyncadd [#allocation9], 4294966272  ;;  %v390_v0 = vld [vmem:[#allocation5 + $0x8] sm:$0xff]  ;;  %v389_v2 = vld [vmem:[#allocation5] sm:$0xff]  ;;  %vm111_vm0 = vcmask 261120   ;;  %s551_s24 = smov [#allocation10]  }
  0x14   :  { %v398_v1 = vld [vmem:[#allocation7 + $0x38] sm:$0xff]  ;;  %121 = vmatpush.bf16.msra.mxu0 %v390_v0  ;;  %v89_v3 = vld [vmem:[#allocation2] sm:$0xff]  ;;  %v397_v4 = vld [vmem:[#allocation7 + $0x30] sm:$0xff]  ;;  %s302_s25 = sshll.u32 %s551_s24, 4  ;;  %s304_s28 = sshll.u32 %s623_s7, 4  ;;  %s303_s25 = int_to_ptr.vmem [resolvable:$true] %s302_s25  ;;  %s305_s28 = int_to_ptr.hbm [resolvable:$true] %s304_s28 }
  0x15   :  { %199 = vmatpush.bf16.msra.mxu1 %v398_v1  ;;  %v95_v5 = vpack.c.bf16 %v89_v3, %v89_v3  ;;  %v396_v6 = vld [vmem:[#allocation7 + $0x28] sm:$0xff]  ;;  %v395_v7 = vld [vmem:[#allocation7 + $0x20] sm:$0xff]  ;;  %v394_v8 = vld [vmem:[#allocation7 + $0x18] sm:$0xff] }
  0x16   :  { %v393_v9 = vld [vmem:[#allocation7 + $0x10] sm:$0xff]  ;;  %v392_v10 = vld [vmem:[#allocation7 + $0x8] sm:$0xff]  ;;  %v391_v11 = vld [vmem:[#allocation7] sm:$0xff] }
  0x17   :  { %v406_v12 = vld [vmem:[#allocation8 + $0x38] sm:$0xff]  ;;  %v405_v13 = vld [vmem:[#allocation8 + $0x30] sm:$0xff]  ;;  %v404_v14 = vld [vmem:[#allocation8 + $0x28] sm:$0xff] }
  0x18   :  { %122 = vmatpush.bf16.msra.mxu0 %v389_v2  ;;  %283 = vmatpush.bf16.msra.mxu2 %v406_v12  ;;  %v403_v15 = vld [vmem:[#allocation8 + $0x20] sm:$0xff]  ;;  %v402_v16 = vld [vmem:[#allocation8 + $0x18] sm:$0xff]  ;;  %v401_v17 = vld [vmem:[#allocation8 + $0x10] sm:$0xff] }
  0x19   :  { %200 = vmatpush.bf16.msra.mxu1 %v397_v4  ;;  %v414_v18 = vld [vmem:[%s618_s2] ss:$0 sm:$0xff]  ;;  %v399_v26 = vld [vmem:[#allocation8] sm:$0xff] }
  0x1a   :  { %v400_v25 = vld [vmem:[#allocation8 + $0x8] sm:$0xff] }
  0x1b   :  { %324 = vmatmul.msk.bf16.vlgmr.msra.gmra.mxu0 %vm111_vm0, %v95_v5  ;;  %v415_v27 = vld [vmem:[%s620_s4] ss:$0 sm:$0xff] }
  0x1c   :  { %284 = vmatpush.bf16.msra.mxu2 %v405_v13  ;;  %v416_v34 = vld [vmem:[%s622_s6] ss:$0 sm:$0xff] }
  0x1d   :  { %201 = vmatpush.bf16.msra.mxu1 %v396_v6 }
  0x20   :  { %285 = vmatpush.bf16.msra.mxu2 %v404_v14 }
  0x21   :  { %202 = vmatpush.bf16.msra.mxu1 %v395_v7 }
  0x24   :  { %286 = vmatpush.bf16.msra.mxu2 %v403_v15 }
  0x25   :  { %203 = vmatpush.bf16.msra.mxu1 %v394_v8 }
  0x28   :  { %287 = vmatpush.bf16.msra.mxu2 %v402_v16 }
  0x29   :  { %204 = vmatpush.bf16.msra.mxu1 %v393_v9 }
  0x2c   :  { %288 = vmatpush.bf16.msra.mxu2 %v401_v17 }
  0x2d   :  { %205 = vmatpush.bf16.msra.mxu1 %v392_v10 }
  0x30   :  { %289 = vmatpush.bf16.msra.mxu2 %v400_v25 }
  0x31   :  { %206 = vmatpush.bf16.msra.mxu1 %v391_v11 }
  0x34   :  { %290 = vmatpush.bf16.msra.mxu2 %v399_v26 }
  0x98   :  { %v124_v19 = vpop.f32.mrf.mxu0 }
  0x99   :  { %v125_v20 = vadd.f32 %v414_v18, %v124_v19 }
  0x9b   :  { %v128_v21 = vmul.f32 0.02, %v125_v20 }
  0x9d   :  { %v129_v22 = vmax.f32 %v125_v20, %v128_v21 }
  0x9f   :  { %v147_v23 = vpack.c.bf16 %v129_v22, %v129_v22 }
  0xa0   :  { %v126_v24 = vpop.f32.mrf.mxu0 }
  0xa1   :  { %207 = vmatmul.bf16.vlgmr.msra.gmra.mxu1 %v147_v23 }
 0x11e   :  { %v208_v28 = vpop.f32.mrf.mxu1 }
 0x11f   :  { %v209_v29 = vadd.f32 %v415_v27, %v208_v28 }
 0x121   :  { %v212_v30 = vmul.f32 0.02, %v209_v29 }
 0x123   :  { %v213_v31 = vmax.f32 %v209_v29, %v212_v30 }
 0x125   :  { %v231_v32 = vpack.c.bf16 %v213_v31, %v213_v31 }
 0x126   :  { %v210_v33 = vpop.f32.mrf.mxu1 }
 0x127   :  { %291 = vmatmul.bf16.vlgmr.msra.gmra.mxu2 %v231_v32 }
 0x1aa   :  { %v292_v35 = vpop.f32.mrf.mxu2 }
 0x1ab   :  { %v293_v36 = vadd.f32 %v416_v34, %v292_v35 }
 0x1ad   :  { %296 = vst [vmem:[#allocation10] sm:$0xff] %v293_v36 }
 0x1ae   :  { %307 = dma.vmem_to_hbm [thread:$0]  %s303_s25, 128, %s305_s28, [#allocation4]  }
 0x1b2   :  { %v294_v37 = vpop.f32.mrf.mxu2 }
 0x1b3   :  { %543 = dma.done.wait [#allocation4], 128  }
 0x1b4   :  { %544 = vsyncadd [#allocation4], 4294967168 }
 0x1b5   :  { %312 = vsyncpa [#allocation3], 1 }
 0x1b6   :  { %313 = vsyncpa [#allocation6], 1 }
 0x1b7   :  { %314 = vsyncpa [#allocation9], 1 }
 0x1b8   :  { %315 = vsyncpa [#allocation4], 1 }

// kernel: _fused_mlp.1
= control target key start
LH: loop header
LB: loop body
LE: loop exit
PB: predicated region body
PF: predicated region fallthrough
CT: control target
= control target key end

     0   :  { %12 = vsyncpa [#allocation3], 0  ;;  %s616_s0 = inlined_call_operand.hbm [shape: f32[8,32], index: 0, kind: input, shape index: {}]   ;;  %s617_s1 = inlined_call_operand.hbm [shape: bf16[32,128], index: 1, kind: input, shape index: {}]   ;;  %s618_s2 = inlined_call_operand.vmem [shape: f32[1,128], index: 2, kind: input, shape index: {}]   ;;  %s619_s3 = inlined_call_operand.hbm [shape: bf16[128,128], index: 3, kind: input, shape index: {}]   ;;  %s620_s4 = inlined_call_operand.vmem [shape: f32[1,128], index: 4, kind: input, shape index: {}]   ;;  %s621_s5 = inlined_call_operand.hbm [shape: bf16[128,128], index: 5, kind: input, shape index: {}]   ;;  %s622_s6 = inlined_call_operand.vmem [shape: f32[1,128], index: 6, kind: input, shape index: {}]   ;;  %s623_s7 = inlined_call_operand.hbm [shape: f32[8,128], index: 7, kind: output, shape index: {}]  }
   0x1   :  { %13 = vsyncpa [#allocation6], 0 }
   0x2   :  { %14 = vsyncpa [#allocation9], 0  ;;  %s31_s26 = sshll.u32 %s617_s1, 4  ;;  %s32_s26 = int_to_ptr.hbm [resolvable:$true] %s31_s26 }
   0x3   :  { %15 = vsyncpa [#allocation4], 0  ;;  %s545_s27 = smov [#allocation5]   ;;  %s21_s8 = sshll.u32 %s616_s0, 4  ;;  %s22_s8 = int_to_ptr.hbm [resolvable:$true] %s21_s8 }
   0x4   :  { %s33_s28 = sshll.u32 %s545_s27, 4  ;;  %s546_s9 = smov 64   ;;  %s34_s28 = int_to_ptr.vmem [resolvable:$true] %s33_s28 }
   0x5   :  { %s547_s10 = smov 4   ;;  %s548_s11 = smov [#allocation2]  }
   0x6   :  { %39 = dma.hbm_to_vmem [thread:$0]  %s32_s26, 256, %s34_s28, [#allocation6], %s546_s9, %s546_s9, %s547_s10  }
   0x7   :  { %s23_s12 = sshll.u32 %s548_s11, 4  ;;  %s46_s15 = sshll.u32 %s619_s3, 4  ;;  %s24_s12 = int_to_ptr.vmem [resolvable:$true] %s23_s12  ;;  %s47_s15 = int_to_ptr.hbm [resolvable:$true] %s46_s15 }
   0x8   :  { %26 = dma.hbm_to_vmem [thread:$0]  %s22_s8, 128, %s24_s12, [#allocation3]  }
   0x9   :  { %s61_s17 = sshll.u32 %s621_s5, 4  ;;  %s549_s18 = smov [#allocation7]   ;;  %s62_s17 = int_to_ptr.hbm [resolvable:$true] %s61_s17 }
   0xa   :  { %s48_s19 = sshll.u32 %s549_s18, 4  ;;  %s550_s0 = smov [#allocation8]   ;;  %s49_s19 = int_to_ptr.vmem [resolvable:$true] %s48_s19 }
   0xb   :  { %54 = dma.hbm_to_vmem [thread:$0]  %s47_s15, 1024, %s49_s19, [#allocation6], %s546_s9, %s546_s9, %s547_s10  }
   0xc   :  { %s63_s20 = sshll.u32 %s550_s0, 4  ;;  %s64_s20 = int_to_ptr.vmem [resolvable:$true] %s63_s20 }
   0xd   :  { %69 = dma.hbm_to_vmem [thread:$0]  %s62_s17, 1024, %s64_s20, [#allocation9], %s546_s9, %s546_s9, %s547_s10  }
   0xe   :  { %537 = dma.done.wait [#allocation3], 128  }
   0xf   :  { %538 = vsyncadd [#allocation3], 4294967168 }
  0x10   :  { %539 = dma.done.wait [#allocation6], 1280  }
  0x11   :  { %540 = vsyncadd [#allocation6], 4294966016 }
  0x12   :  { %541 = dma.done.wait [#allocation9], 1024  }
  0x13   :  { %542 = vsyncadd [#allocation9], 4294966272  ;;  %v390_v0 = vld [vmem:[#allocation5 + $0x8] sm:$0xff]  ;;  %v389_v2 = vld [vmem:[#allocation5] sm:$0xff]  ;;  %vm111_vm0 = vcmask 261120   ;;  %s551_s24 = smov [#allocation10]  }
  0x14   :  { %v398_v1 = vld [vmem:[#allocation7 + $0x38] sm:$0xff]  ;;  %121 = vmatpush.bf16.msra.mxu0 %v390_v0  ;;  %v89_v3 = vld [vmem:[#allocation2] sm:$0xff]  ;;  %v397_v4 = vld [vmem:[#allocation7 + $0x30] sm:$0xff]  ;;  %s302_s25 = sshll.u32 %s551_s24, 4  ;;  %s304_s28 = sshll.u32 %s623_s7, 4  ;;  %s303_s25 = int_to_ptr.vmem [resolvable:$true] %s302_s25  ;;  %s305_s28 = int_to_ptr.hbm [resolvable:$true] %s304_s28 }
  0x15   :  { %199 = vmatpush.bf16.msra.mxu1 %v398_v1  ;;  %v95_v5 = vpack.c.bf16 %v89_v3, %v89_v3  ;;  %v396_v6 = vld [vmem:[#allocation7 + $0x28] sm:$0xff]  ;;  %v395_v7 = vld [vmem:[#allocation7 + $0x20] sm:$0xff]  ;;  %v394_v8 = vld [vmem:[#allocation7 + $0x18] sm:$0xff] }
  0x16   :  { %v393_v9 = vld [vmem:[#allocation7 + $0x10] sm:$0xff]  ;;  %v392_v10 = vld [vmem:[#allocation7 + $0x8] sm:$0xff]  ;;  %v391_v11 = vld [vmem:[#allocation7] sm:$0xff] }
  0x17   :  { %v406_v12 = vld [vmem:[#allocation8 + $0x38] sm:$0xff]  ;;  %v405_v13 = vld [vmem:[#allocation8 + $0x30] sm:$0xff]  ;;  %v404_v14 = vld [vmem:[#allocation8 + $0x28] sm:$0xff] }
  0x18   :  { %122 = vmatpush.bf16.msra.mxu0 %v389_v2  ;;  %283 = vmatpush.bf16.msra.mxu2 %v406_v12  ;;  %v403_v15 = vld [vmem:[#allocation8 + $0x20] sm:$0xff]  ;;  %v402_v16 = vld [vmem:[#allocation8 + $0x18] sm:$0xff]  ;;  %v401_v17 = vld [vmem:[#allocation8 + $0x10] sm:$0xff] }
  0x19   :  { %200 = vmatpush.bf16.msra.mxu1 %v397_v4  ;;  %v414_v18 = vld [vmem:[%s618_s2] ss:$0 sm:$0xff]  ;;  %v399_v26 = vld [vmem:[#allocation8] sm:$0xff] }
  0x1a   :  { %v400_v25 = vld [vmem:[#allocation8 + $0x8] sm:$0xff] }
  0x1b   :  { %324 = vmatmul.msk.bf16.vlgmr.msra.gmra.mxu0 %vm111_vm0, %v95_v5  ;;  %v415_v27 = vld [vmem:[%s620_s4] ss:$0 sm:$0xff] }
  0x1c   :  { %284 = vmatpush.bf16.msra.mxu2 %v405_v13  ;;  %v416_v34 = vld [vmem:[%s622_s6] ss:$0 sm:$0xff] }
  0x1d   :  { %201 = vmatpush.bf16.msra.mxu1 %v396_v6 }
  0x20   :  { %285 = vmatpush.bf16.msra.mxu2 %v404_v14 }
  0x21   :  { %202 = vmatpush.bf16.msra.mxu1 %v395_v7 }
  0x24   :  { %286 = vmatpush.bf16.msra.mxu2 %v403_v15 }
  0x25   :  { %203 = vmatpush.bf16.msra.mxu1 %v394_v8 }
  0x28   :  { %287 = vmatpush.bf16.msra.mxu2 %v402_v16 }
  0x29   :  { %204 = vmatpush.bf16.msra.mxu1 %v393_v9 }
  0x2c   :  { %288 = vmatpush.bf16.msra.mxu2 %v401_v17 }
  0x2d   :  { %205 = vmatpush.bf16.msra.mxu1 %v392_v10 }
  0x30   :  { %289 = vmatpush.bf16.msra.mxu2 %v400_v25 }
  0x31   :  { %206 = vmatpush.bf16.msra.mxu1 %v391_v11 }
  0x34   :  { %290 = vmatpush.bf16.msra.mxu2 %v399_v26 }
  0x98   :  { %v124_v19 = vpop.f32.mrf.mxu0 }
  0x99   :  { %v125_v20 = vadd.f32 %v414_v18, %v124_v19 }
  0x9b   :  { %v128_v21 = vmul.f32 0.02, %v125_v20 }
  0x9d   :  { %v129_v22 = vmax.f32 %v125_v20, %v128_v21 }
  0x9f   :  { %v147_v23 = vpack.c.bf16 %v129_v22, %v129_v22 }
  0xa0   :  { %v126_v24 = vpop.f32.mrf.mxu0 }
  0xa1   :  { %207 = vmatmul.bf16.vlgmr.msra.gmra.mxu1 %v147_v23 }
 0x11e   :  { %v208_v28 = vpop.f32.mrf.mxu1 }
 0x11f   :  { %v209_v29 = vadd.f32 %v415_v27, %v208_v28 }
 0x121   :  { %v212_v30 = vmul.f32 0.02, %v209_v29 }
 0x123   :  { %v213_v31 = vmax.f32 %v209_v29, %v212_v30 }
 0x125   :  { %v231_v32 = vpack.c.bf16 %v213_v31, %v213_v31 }
 0x126   :  { %v210_v33 = vpop.f32.mrf.mxu1 }
 0x127   :  { %291 = vmatmul.bf16.vlgmr.msra.gmra.mxu2 %v231_v32 }
 0x1aa   :  { %v292_v35 = vpop.f32.mrf.mxu2 }
 0x1ab   :  { %v293_v36 = vadd.f32 %v416_v34, %v292_v35 }
 0x1ad   :  { %296 = vst [vmem:[#allocation10] sm:$0xff] %v293_v36 }
 0x1ae   :  { %307 = dma.vmem_to_hbm [thread:$0]  %s303_s25, 128, %s305_s28, [#allocation4]  }
 0x1b2   :  { %v294_v37 = vpop.f32.mrf.mxu2 }
 0x1b3   :  { %543 = dma.done.wait [#allocation4], 128  }
 0x1b4   :  { %544 = vsyncadd [#allocation4], 4294967168 }
 0x1b5   :  { %312 = vsyncpa [#allocation3], 1 }
 0x1b6   :  { %313 = vsyncpa [#allocation6], 1 }
 0x1b7   :  { %314 = vsyncpa [#allocation9], 1 }
 0x1b8   :  { %315 = vsyncpa [#allocation4], 1 }

</bundles_post_ra>
